<compile_context>
chip_gen: v6e
topology: v6e:2x2x1
jax: 0.10.0
libtpu: 0.0.40
codegen_flags: <defaults>
</compile_context>

<pallas_src>
import functools

import numpy as np

import jax
import jax.numpy as jnp
from jax.experimental import pallas as pl
from jax.experimental.pallas import tpu as pltpu

# Tile plan: 256x256 fills the 256-wide MXU on v6e/v7x and amortizes the
# ~0.35us per-grid-step overhead; per-step VMEM (inputs double-buffered +
# scratch + unrolled-head temporaries) stays well under the 48 MiB limit,
# which itself leaves ~25% headroom on v7x's 64 MiB physical VMEM.
TILE_DST = 256
TILE_SRC = 256
TILE_N = 256            # phase-1 node tile (row padding unit)
LANE = 128
ALPHA_PAD = 128         # lane-dense slab for per-head a_src / a_dst
ACC_PAD = 128           # lane-dense slab for packed per-head [values | denom]
VMEM_LIMIT = 48 * 1024 * 1024

NEG_SLOPE = 0.2         # GATConv default negative_slope
MASK_VAL = -2e30        # additive mask; strictly below M_INIT so fully masked
M_INIT = -1e30          # rows give exp()==0, never exp(0)==1 (no NaNs)


def _round_up(v, m):
    return ((v + m - 1) // m) * m


# ----------------------------------------------------------------------------
# Phase 1: projection + ones column + per-head attention coefficients.
# ----------------------------------------------------------------------------
def _gat_project_kernel(x_ref, w_ref, att_ref, ones_ref, h_ref, alpha_ref):
    """h_packed = [x@W | 1] per head (bf16); alpha = h @ att (a_src|a_dst)."""
    x = x_ref[...].astype(jnp.bfloat16)
    h = jnp.dot(x, w_ref[...], preferred_element_type=jnp.float32)  # [T, 128]
    hb = (h + ones_ref[...]).astype(jnp.bfloat16)   # add per-head ones column
    # bf16 x bf16 single-pass MXU matmul; att rows at the ones lanes are zero.
    alpha_ref[...] = jnp.dot(hb, att_ref[...],
                             preferred_element_type=jnp.float32)    # [T, 128]
    h_ref[...] = hb


# ----------------------------------------------------------------------------
# Phase 2: masked edge-softmax + neighbor aggregation (online softmax) over a
# compacted grid of non-empty adjacency blocks.
# ----------------------------------------------------------------------------
def _gat_attention_kernel(nnz_ref, blk_ref, alpha_ref, asrc_ref, h_ref,
                          adj_ref, bias_ref, out_ref, m_ref, acc_ref,
                          adst_ref, *, heads, out_channels, concat, apply_elu,
                          out_pad):
    C = out_channels
    Cp = C + 1                       # per-head stride in packed h / accumulator
    HC = heads * C
    i = pl.program_id(0)             # dst-node tile (parallel)
    j = pl.program_id(1)             # compacted src-block index (reduction)
    n_j = pl.num_programs(1)

    @pl.when(j == 0)
    def _init():
        m_ref[...] = jnp.full((heads, TILE_DST, 1), M_INIT, jnp.float32)
        acc_ref[...] = jnp.zeros((TILE_DST, ACC_PAD), jnp.float32)
        # Hoist per-head a_dst column extraction to once per dst tile.
        alpha = alpha_ref[...]
        for hd in range(heads):
            adst_ref[hd] = alpha[:, heads + hd:heads + hd + 1]       # [Td, 1]

    # Only real (non-empty) blocks are visited; the padded tail is skipped.
    @pl.when(j < nnz_ref[i])
    def _compute():
        # Additive mask bias computed once per block (no per-head select).
        neg = jnp.where(adj_ref[...] > 0, 0.0, MASK_VAL)             # [Td, Ts]
        a_src = asrc_ref[...]                                        # [8, Ts]
        h_blk = h_ref[...]                                           # [Ts, 128]
        pv_parts = []
        corr_parts = []
        for hd in range(heads):                                      # static
            s = adst_ref[hd] + a_src[hd:hd + 1, :]                   # [Td, Ts]
            s = jnp.maximum(s, NEG_SLOPE * s) + neg                  # leaky+mask
            m_prev = m_ref[hd]                                       # [Td, 1]
            m_new = jnp.maximum(m_prev, jnp.max(s, axis=-1, keepdims=True))
            corr = jnp.exp(m_prev - m_new)
            p = jnp.exp(s - m_new).astype(jnp.bfloat16)   # masked -> 0
            # [Td, Cp] = values (C lanes) and row-sum denominator (1 lane),
            # both from one MXU matmul thanks to the packed ones column.
            pv_parts.append(jnp.dot(p, h_blk[:, hd * Cp:(hd + 1) * Cp],
                                    preferred_element_type=jnp.float32))
            corr_parts.append(jnp.broadcast_to(corr, (TILE_DST, Cp)))
            m_ref[hd] = m_new
        pad_w = ACC_PAD - heads * Cp
        if pad_w:
            pv_parts.append(jnp.zeros((TILE_DST, pad_w), jnp.float32))
            corr_parts.append(jnp.ones((TILE_DST, pad_w), jnp.float32))
        pv = jnp.concatenate(pv_parts, axis=-1)                      # [Td, 128]
        corr_d = jnp.concatenate(corr_parts, axis=-1)                # [Td, 128]
        # Single lane-dense accumulator update (one dense mul-add + store).
        acc_ref[...] = corr_d * acc_ref[...] + pv

    @pl.when(j == n_j - 1)
    def _finalize():
        acc = acc_ref[...]
        bias = bias_ref[...]                                         # [1, out_pad]
        parts = []
        for hd in range(heads):
            num = acc[:, hd * Cp:hd * Cp + C]
            den = acc[:, hd * Cp + C:hd * Cp + C + 1]
            # den >= 1 thanks to self-loops; approx reciprocal runs on the EUP.
            parts.append(num * pl.reciprocal(den, approx=True))
        if concat:
            v = jnp.concatenate(parts, axis=-1) + bias[:, :HC]
            width = HC
        else:
            v = parts[0]
            for t in parts[1:]:
                v = v + t
            v = v * (1.0 / heads) + bias[:, :C]
            width = C
        if apply_elu:                                                # F.elu
            v = jnp.where(v > 0.0, v, jnp.exp(v) - 1.0)
        if width < out_pad:
            v = jnp.concatenate(
                [v, jnp.zeros((TILE_DST, out_pad - width), jnp.float32)],
                axis=-1)
        out_ref[...] = v                      # single lane-dense [Td, 128] store


# ----------------------------------------------------------------------------
# One GATConv layer (projection pallas_call + attention pallas_call).
# ----------------------------------------------------------------------------
def _gat_layer(x_pad, adj, nnz, blk_ids, w, att_src, att_dst, bias, *, heads,
               out_channels, concat, apply_elu):
    n_pad, f_in = x_pad.shape
    C = out_channels
    Cp = C + 1
    HC = heads * C
    assert heads * Cp <= ACC_PAD and 2 * heads <= ALPHA_PAD and heads <= 8
    out_feats = HC if concat else C
    out_pad = _round_up(out_feats, LANE)

    # ---- packing (tiny, plain XLA): per-head [W_head | ones] layout ---------
    w_packed = jnp.zeros((f_in, ACC_PAD), jnp.float32)
    att_packed = jnp.zeros((ACC_PAD, ALPHA_PAD), jnp.float32)
    ones_row = jnp.zeros((1, ACC_PAD), jnp.float32)
    for hd in range(heads):
        w_packed = w_packed.at[:, hd * Cp:hd * Cp + C].set(
            w[:, hd * C:(hd + 1) * C])
        att_packed = att_packed.at[hd * Cp:hd * Cp + C, hd].set(att_src[hd])
        att_packed = att_packed.at[hd * Cp:hd * Cp + C, heads + hd].set(
            att_dst[hd])
        ones_row = ones_row.at[0, hd * Cp + C].set(1.0)
    w_packed = w_packed.astype(jnp.bfloat16)
    att_packed = att_packed.astype(jnp.bfloat16)
    bias_pad = jnp.zeros((1, out_pad), jnp.float32).at[0, :out_feats].set(
        bias.reshape(-1))

    # ---- phase 1: projection + attention coefficients ----------------------
    n_tiles = n_pad // TILE_N
    h, alpha = pl.pallas_call(
        _gat_project_kernel,
        grid=(n_tiles,),
        in_specs=[
            pl.BlockSpec((TILE_N, f_in), lambda i: (i, 0)),
            pl.BlockSpec((f_in, ACC_PAD), lambda i: (0, 0)),
            pl.BlockSpec((ACC_PAD, ALPHA_PAD), lambda i: (0, 0)),
            pl.BlockSpec((1, ACC_PAD), lambda i: (0, 0)),
        ],
        out_specs=[
            pl.BlockSpec((TILE_N, ACC_PAD), lambda i: (i, 0)),
            pl.BlockSpec((TILE_N, ALPHA_PAD), lambda i: (i, 0)),
        ],
        out_shape=(
            jax.ShapeDtypeStruct((n_pad, ACC_PAD), jnp.bfloat16),
            jax.ShapeDtypeStruct((n_pad, ALPHA_PAD), jnp.float32),
        ),
        compiler_params=pltpu.CompilerParams(
            dimension_semantics=("parallel",),
            vmem_limit_bytes=VMEM_LIMIT),
    )(x_pad, w_packed, att_packed, ones_row)

    # Source-side coefficients head-major [8, N_pad]: the attention kernel
    # broadcasts row hd along sublanes with no in-kernel transpose.
    a_src_t = jnp.zeros((8, n_pad), jnp.float32).at[:heads, :].set(
        alpha[:, :heads].T)

    # ---- phase 2: flash-style masked softmax over compacted block grid ------
    max_nnz = blk_ids.shape[1]
    grid = (n_pad // TILE_DST, max_nnz)
    kernel = functools.partial(
        _gat_attention_kernel, heads=heads, out_channels=C, concat=concat,
        apply_elu=apply_elu, out_pad=out_pad)
    out = pl.pallas_call(
        kernel,
        grid_spec=pltpu.PrefetchScalarGridSpec(
            num_scalar_prefetch=2,            # nnz[i], blk_ids[i, j]
            grid=grid,
            in_specs=[
                pl.BlockSpec((TILE_DST, ALPHA_PAD),
                             lambda i, j, nnz, blk: (i, 0)),
                pl.BlockSpec((8, TILE_SRC),
                             lambda i, j, nnz, blk: (0, blk[i, j])),
                pl.BlockSpec((TILE_SRC, ACC_PAD),
                             lambda i, j, nnz, blk: (blk[i, j], 0)),
                pl.BlockSpec((TILE_DST, TILE_SRC),
                             lambda i, j, nnz, blk: (i, blk[i, j])),
                pl.BlockSpec((1, out_pad), lambda i, j, nnz, blk: (0, 0)),
            ],
            out_specs=pl.BlockSpec((TILE_DST, out_pad),
                                   lambda i, j, nnz, blk: (i, 0)),
            scratch_shapes=[
                pltpu.VMEM((heads, TILE_DST, 1), jnp.float32),  # running max
                pltpu.VMEM((TILE_DST, ACC_PAD), jnp.float32),   # dense accum
                pltpu.VMEM((heads, TILE_DST, 1), jnp.float32),  # a_dst columns
            ]),
        out_shape=jax.ShapeDtypeStruct((n_pad, out_pad), jnp.float32),
        compiler_params=pltpu.CompilerParams(
            dimension_semantics=("parallel", "arbitrary"),
            vmem_limit_bytes=VMEM_LIMIT),
    )(nnz, blk_ids, alpha, a_src_t, h, adj, bias_pad)
    return out


# ----------------------------------------------------------------------------
# Graph preprocessing (host numpy: dense mask + compacted non-empty blocks).
# ----------------------------------------------------------------------------
def _build_graph_blocks(edge_index, n_pad):
    """adj[dst,src]=1 (+ self loops on every row, incl. padded ones, so every
    softmax row has denominator >= 1), plus per-dst-tile lists of non-empty
    src-block indices for the compacted reduction grid."""
    src = np.asarray(edge_index[0]).astype(np.int64)
    dst = np.asarray(edge_index[1]).astype(np.int64)
    adj = np.zeros((n_pad, n_pad), np.int8)
    adj[dst, src] = 1
    diag = np.arange(n_pad)
    adj[diag, diag] = 1
    gd, gs = n_pad // TILE_DST, n_pad // TILE_SRC
    has = adj.reshape(gd, TILE_DST, gs, TILE_SRC).any(axis=(1, 3))
    nnz = has.sum(axis=1).astype(np.int32)          # >= 1 (self loops)
    max_nnz = int(nnz.max())
    blk = np.zeros((gd, max_nnz), np.int32)         # pad with block 0 (guarded)
    for i in range(gd):
        ids = np.nonzero(has[i])[0].astype(np.int32)
        blk[i, :ids.size] = ids
    return jnp.asarray(adj), jnp.asarray(nnz), jnp.asarray(blk)


def init_gat_params(key, in_dim, out_dim, hid=8, in_head=8, out_head=4):
    """Deterministic glorot-ish init matching GATConv parameter shapes."""
    ks = jax.random.split(key, 8)

    def glorot(k, shape):
        fan_in, fan_out = shape[0], shape[-1]
        scale = jnp.sqrt(6.0 / (fan_in + fan_out))
        return jax.random.uniform(k, shape, jnp.float32, -scale, scale)

    return {
        # conv1: in_dim -> hid, heads=in_head, concat=True
        "w1": glorot(ks[0], (in_dim, in_head * hid)),
        "att_src1": glorot(ks[1], (in_head, hid)),
        "att_dst1": glorot(ks[2], (in_head, hid)),
        "bias1": jnp.zeros((1, in_head * hid), jnp.float32),
        # conv2: hid*in_head -> out_dim, heads=out_head, concat=False (mean)
        "w2": glorot(ks[3], (hid * in_head, out_head * out_dim)),
        "att_src2": glorot(ks[4], (out_head, out_dim)),
        "att_dst2": glorot(ks[5], (out_head, out_dim)),
        "bias2": jnp.zeros((1, out_dim), jnp.float32),
    }


def gat_forward(params, x, edge_index, *, out_dim, hid=8, in_head=8,
                out_head=4):
    n = x.shape[0]
    n_pad = _round_up(max(n, TILE_N), TILE_N)       # TILE_N==TILE_DST==TILE_SRC
    x_pad = jnp.zeros((n_pad, x.shape[1]), jnp.float32).at[:n, :].set(
        x.astype(jnp.float32))
    # Host-side block compaction (static grid extent derived from the data).
    adj, nnz, blk_ids = _build_graph_blocks(edge_index, n_pad)

    # F.dropout(p=0.3) -> identity in eval mode.
    out1 = _gat_layer(x_pad, adj, nnz, blk_ids, params["w1"],
                      params["att_src1"], params["att_dst1"], params["bias1"],
                      heads=in_head, out_channels=hid, concat=True,
                      apply_elu=True)
    x1 = out1[:, :in_head * hid]          # drop lane padding; rows stay padded
    # F.dropout(p=0.3) -> identity in eval mode.
    out2 = _gat_layer(x1, adj, nnz, blk_ids, params["w2"],
                      params["att_src2"], params["att_dst2"], params["bias2"],
                      heads=out_head, out_channels=out_dim, concat=False,
                      apply_elu=False)
    # activation=None -> return as-is.
    return out2[:n, :out_dim]


if __name__ == "__main__":
    key = jax.random.PRNGKey(0)
    k_x, k1, k2, k3, k4, kp = jax.random.split(key, 6)

    N, IN_DIM, OUT_DIM = 300, 4, 3

    x = jax.random.normal(k_x, (N, IN_DIM), jnp.float32)
    # Block-sparse synthetic graph: most edges among the first 200 nodes plus
    # a few from high-index sources, so the two dst tiles have different
    # numbers of non-empty adjacency blocks (exercises the compacted grid and
    # the guarded padded step).
    src_a = jax.random.randint(k1, (600,), 0, 200)
    dst_a = jax.random.randint(k2, (600,), 0, 200)
    src_b = jax.random.randint(k3, (100,), 256, N)
    dst_b = jax.random.randint(k4, (100,), 0, 200)
    edge_index = jnp.stack([jnp.concatenate([src_a, src_b]),
                            jnp.concatenate([dst_a, dst_b])],
                           axis=0).astype(jnp.int32)            # [2, 700]

    params = init_gat_params(kp, IN_DIM, OUT_DIM)

    out = jax.block_until_ready(
        gat_forward(params, x, edge_index, out_dim=OUT_DIM))
    assert out.shape == (N, OUT_DIM)
    assert bool(jnp.all(jnp.isfinite(out)))
    print("KERNEL_OK")
</pallas_src>

<mosaic_0001>
module attributes {stable_mosaic.version = 11 : i64} {
  func.func @_gat_project_kernel(%arg0: i32, %arg1: memref<256x4xf32, #tpu.memory_space<vmem>>, %arg2: memref<4x128xbf16, #tpu.memory_space<vmem>>, %arg3: memref<128x128xbf16, #tpu.memory_space<vmem>>, %arg4: memref<1x128xf32, #tpu.memory_space<vmem>>, %arg5: memref<256x128xbf16, #tpu.memory_space<vmem>>, %arg6: memref<256x128xf32, #tpu.memory_space<vmem>>) attributes {dimension_semantics = [#tpu.dimension_semantics<parallel>], iteration_bounds = array<i64: 2>, scalar_prefetch = 0 : i64, scratch_operands = 0 : i64, tpu.core_type = #tpu.core_type<tc>, window_params = [{transform_indices = @transform_0, window_bounds = array<i64: 256, 4>}, {pipeline_mode = #tpu.pipeline_mode<synchronous>, transform_indices = @transform_1, window_bounds = array<i64: 4, 128>}, {pipeline_mode = #tpu.pipeline_mode<synchronous>, transform_indices = @transform_2, window_bounds = array<i64: 128, 128>}, {pipeline_mode = #tpu.pipeline_mode<synchronous>, transform_indices = @transform_3, window_bounds = array<i64: 1, 128>}, {transform_indices = @transform_4, window_bounds = array<i64: 256, 128>}, {transform_indices = @transform_5, window_bounds = array<i64: 256, 128>}]} {
    %c0 = arith.constant 0 : index
    %c0_0 = arith.constant 0 : index
    %0 = vector.load %arg1[%c0, %c0_0] : memref<256x4xf32, #tpu.memory_space<vmem>>, vector<256x4xf32>
    %1 = arith.truncf %0 : vector<256x4xf32> to vector<256x4xbf16>
    %c0_1 = arith.constant 0 : index
    %c0_2 = arith.constant 0 : index
    %2 = vector.load %arg2[%c0_1, %c0_2] : memref<4x128xbf16, #tpu.memory_space<vmem>>, vector<4x128xbf16>
    %cst = arith.constant dense<0.000000e+00> : vector<256x128xf32>
    %3 = tpu.matmul %1, %2, %cst {dimension_numbers = #tpu.dot_dimension_numbers<[1], [0], [0], [1], [0, 0, 1, 1], [], []>} : vector<256x4xbf16>, vector<4x128xbf16>, vector<256x128xf32> -> vector<256x128xf32>
    %c0_3 = arith.constant 0 : index
    %c0_4 = arith.constant 0 : index
    %4 = vector.load %arg4[%c0_3, %c0_4] : memref<1x128xf32, #tpu.memory_space<vmem>>, vector<1x128xf32>
    %5 = vector.broadcast %4 : vector<1x128xf32> to vector<256x128xf32>
    %6 = arith.addf %3, %5 : vector<256x128xf32>
    %7 = arith.truncf %6 : vector<256x128xf32> to vector<256x128xbf16>
    %c0_5 = arith.constant 0 : index
    %c0_6 = arith.constant 0 : index
    %8 = vector.load %arg3[%c0_5, %c0_6] : memref<128x128xbf16, #tpu.memory_space<vmem>>, vector<128x128xbf16>
    %cst_7 = arith.constant dense<0.000000e+00> : vector<256x128xf32>
    %9 = tpu.matmul %7, %8, %cst_7 {dimension_numbers = #tpu.dot_dimension_numbers<[1], [0], [0], [1], [0, 0, 1, 1], [], []>} : vector<256x128xbf16>, vector<128x128xbf16>, vector<256x128xf32> -> vector<256x128xf32>
    %c0_8 = arith.constant 0 : index
    %c0_9 = arith.constant 0 : index
    %10 = vector.load %arg6[%c0_8, %c0_9] : memref<256x128xf32, #tpu.memory_space<vmem>>, vector<256x128xf32>
    tpu.vector_store %arg6[%c0_8, %c0_9], %9 {strides = array<i32>} : memref<256x128xf32, #tpu.memory_space<vmem>>, vector<256x128xf32>,
    %c0_10 = arith.constant 0 : index
    %c0_11 = arith.constant 0 : index
    %11 = vector.load %arg5[%c0_10, %c0_11] : memref<256x128xbf16, #tpu.memory_space<vmem>>, vector<256x128xbf16>
    tpu.vector_store %arg5[%c0_10, %c0_11], %7 {strides = array<i32>} : memref<256x128xbf16, #tpu.memory_space<vmem>>, vector<256x128xbf16>,
    return
  }
  func.func @transform_0(%arg0: i32) -> (i32, i32) {
    %c0_i32 = arith.constant 0 : i32
    %c0_i32_0 = arith.constant 0 : i32
    return %arg0, %c0_i32 : i32, i32
  }
  func.func @transform_1(%arg0: i32) -> (i32, i32) {
    %c0_i32 = arith.constant 0 : i32
    %c0_i32_0 = arith.constant 0 : i32
    %c0_i32_1 = arith.constant 0 : i32
    return %c0_i32, %c0_i32_0 : i32, i32
  }
  func.func @transform_2(%arg0: i32) -> (i32, i32) {
    %c0_i32 = arith.constant 0 : i32
    %c0_i32_0 = arith.constant 0 : i32
    %c0_i32_1 = arith.constant 0 : i32
    return %c0_i32, %c0_i32_0 : i32, i32
  }
  func.func @transform_3(%arg0: i32) -> (i32, i32) {
    %c0_i32 = arith.constant 0 : i32
    %c0_i32_0 = arith.constant 0 : i32
    %c0_i32_1 = arith.constant 0 : i32
    return %c0_i32, %c0_i32_0 : i32, i32
  }
  func.func @transform_4(%arg0: i32) -> (i32, i32) {
    %c0_i32 = arith.constant 0 : i32
    %c0_i32_0 = arith.constant 0 : i32
    return %arg0, %c0_i32 : i32, i32
  }
  func.func @transform_5(%arg0: i32) -> (i32, i32) {
    %c0_i32 = arith.constant 0 : i32
    %c0_i32_0 = arith.constant 0 : i32
    return %arg0, %c0_i32 : i32, i32
  }
}

</mosaic_0001>

<bundles_post_ra>
// kernel: tpu_custom_call.1
= control target key start
LH: loop header
LB: loop body
LE: loop exit
PB: predicated region body
PF: predicated region fallthrough
CT: control target
= control target key end

     0   :  { %11 = vsyncpa [#allocation3], 0  ;;  %s1885_s0 = inlined_call_operand.vmem [shape: f32[512,4], index: 0, kind: input, shape index: {}]   ;;  %s1886_s1 = inlined_call_operand.vmem [shape: bf16[4,128], index: 1, kind: input, shape index: {}]   ;;  %s1887_s2 = inlined_call_operand.vmem [shape: bf16[128,128], index: 2, kind: input, shape index: {}]   ;;  %s1888_s3 = inlined_call_operand.vmem [shape: f32[1,128], index: 3, kind: input, shape index: {}]   ;;  %s1889_s4 = inlined_call_operand.hbm [shape: bf16[512,128], index: 4, kind: output, shape index: {0}]   ;;  %s1890_s5 = inlined_call_operand.hbm [shape: f32[512,128], index: 5, kind: output, shape index: {1}]  }
   0x1   :  { %13 = vsyncpa [#allocation3 + $0x1], 0 }
   0x2   :  { %14 = vsyncpa [#allocation5], 0 }
   0x3   :  { %16 = vsyncpa [#allocation5 + $0x1], 0  ;;  %s1581_s18 = smov 0   ;;  %s1583_s19 = smov 0  }
   0x4   :  { %s1585_s20 = smov 0   ;;  %s1587_s21 = smov 0  }
   0x5 LB: > { %s1602_s22 = sadd.s32 4294967295, %s1543_s21   ;;  %s1055_s23 = sadd.s32 4294967294, %s1543_s21   ;;  %s1543_s21 = sphi %s1587_s21, %s1896_s21   ;;  %s1539_s20 = sphi %s1585_s20, %s1895_s20   ;;  %s1535_s19 = sphi %s1583_s19, %s1894_s19   ;;  %s1531_s18 = sphi %s1581_s18, %s1893_s18  }
   0x6   : > { %s1606_s24 = sadd.s32 1, %s1543_s21   ;;  %s118_s25 = sadd.s32 1, %s1539_s20 }
   0x7   : > { %s115_s26 = ssub.s32 %s1543_s21, %s1606_s24  ;;  %p128_p0 = scmp.ne.s32.totalorder %s1539_s20, %s1535_s19 }
   0x8   : > { %p116_p1 = scmp.eq.s32.totalorder %s115_s26, 0  ;;  %p129_p2 = scmp.eq.s32.totalorder %s1602_s22, 1 }
   0x9   : > { %p134_p3 = scmp.ne.s32.totalorder %s1535_s19, %s1531_s18  ;;  %p135_p4 = scmp.eq.s32.totalorder %s1055_s23, 1 }
   0xa   : > { %s1617_s27 = scalar_select %p116_p1, %s1539_s20, %s118_s25  }
   0xb   : > { %p1619_p5 = por %p129_p2, %p128_p0  ;;  %p1623_p6 = por %p135_p4, %p134_p3 }
   0xc   : > { %p1058_p7 = scmp.ge.s32.totalorder %s1543_s21, 1  ;;  %p197_p8 = scmp.lt.s32.totalorder %s1543_s21, 3 }
   0xe   : > { %p198_p9 = pnand %p1058_p7, %p197_p8 }
   0xf   : > { %s1061_s7 = sshll.u32 (!%p198_p9), %s1602_s22, 5  ;;  %s1545_s8 = smov (!%p198_p9), [#allocation2]  }
  0x10   : > { %201 = sbr.rel (%p198_p9) target bundleno = 501 (0x1f5), region = 36  ;;  %p231_p10 = scmp.lt.s32.totalorder (!%p198_p9), %s1061_s7, 63 }
  0x11   : > { %s1457_s9 = sshll.u32 (!%p198_p9), %s1545_s8, 4  ;;  %s1458_s9 = int_to_ptr.vmem [resolvable:$false] %s1457_s9 }
  0x12   : > { %s1459_s10 = scalar_lea.vmem (!%p198_p9), %s1458_s9, 4096 }
  0x15   : > { %v287_v0 = vld [vmem:[%s1886_s1] sm:$0x3]  ;;  %vm344_vm0 = vcmask 1041408   ;;  %v1445_v1 = vld [vmem:[%s1887_s2 + $0x38] sm:$0xff]   ;;  %v1446_v3 = vld [vmem:[%s1887_s2 + $0x30] sm:$0xff]   ;;  %s1898_s7 = smov (!%p231_p10, %s1061_s7), 63 }
  0x16   : > { %1396 = vmatprep.subr.msk.bf16.mxu0 %vm344_vm0, %v287_v0  ;;  %v346_v2 = vsel %vm344_vm0, %v287_v0, 0  ;;  %1380 = vmatprep.subr.bf16.mxu1 %v1445_v1  ;;  %s1062_s12 = sshll.u32 %s1898_s7, 3  ;;  %v1447_v4 = vld [vmem:[%s1887_s2 + $0x28] sm:$0xff]   ;;  %vm295_vm1 = vcmask 31744   ;;  %v1448_v14 = vld [vmem:[%s1887_s2 + $0x20] sm:$0xff]   ;;  %v1449_v19 = vld [vmem:[%s1887_s2 + $0x18] sm:$0xff]  }
  0x17   : > { %1299 = vmatpush3.bf16.msra.mxu0 %v346_v2  ;;  %1388 = vmatpush3.bf16.msra.mxu1 %v1445_v1  ;;  %s1645_s17 = scalar_lea.vmem %s1885_s0, %s1062_s12  ;;  %v1450_v55 = vld [vmem:[%s1887_s2 + $0x10] sm:$0xff]   ;;  %v1451_v56 = vld [vmem:[%s1887_s2 + $0x8] sm:$0xff]   ;;  %v1452_v57 = vld [vmem:[%s1887_s2] sm:$0xff]   ;;  %s1711_s12 = sand.u32 1, %s1535_s19  }
  0x18   : > { %1332 = vmatprep.subr.bf16.mxu0 %v1445_v1  ;;  %1381 = vmatprep.subr.bf16.mxu1 %v1446_v3  ;;  %v239_v5 = vld [vmem:[%s1645_s17] sm:$0xff]  ;;  %v240_v6 = vld [vmem:[%s1645_s17 + $0x8] sm:$0xff]  ;;  %v241_v7 = vld [vmem:[%s1645_s17 + $0x10] sm:$0xff]  ;;  %s1059_s15 = sshll.u32 %s1711_s12, 7  ;;  %s927_s6 = scalar_lea.sflag [#allocation3], %s1711_s12 }
  0x19   : > { %v271_v8 = vpack.c.bf16 %v240_v6, %v239_v5  ;;  %v242_v9 = vld [vmem:[%s1645_s17 + $0x18] sm:$0xff]  ;;  %v243_v10 = vld [vmem:[%s1645_s17 + $0x20] sm:$0xff]  ;;  %v244_v11 = vld [vmem:[%s1645_s17 + $0x28] sm:$0xff]  ;;  %s1723_s16 = scalar_lea.vmem [#allocation2], %s1059_s15 }
  0x1a   : > { %v272_v12 = vpack.c.bf16 %v242_v9, %v241_v7  ;;  %v273_v13 = vpack.c.bf16 %v244_v11, %v243_v10  ;;  %v245_v15 = vld [vmem:[%s1645_s17 + $0x30] sm:$0xff]  ;;  %v246_v16 = vld [vmem:[%s1645_s17 + $0x38] sm:$0xff]  ;;  %v247_v17 = vld [vmem:[%s1645_s17 + $0x40] sm:$0xff]  ;;  %s945_s23 = sshll.u32 %s1723_s16, 4  ;;  %s1776_s23 = int_to_ptr.vmem [resolvable:$true] %s945_s23 }
  0x1b   : > { %1389 = vmatpush3.bf16.msra.mxu1 %v1446_v3  ;;  %1300 = vmatprep.mubr.msk.bf16.mxu0 %vm295_vm1, %v271_v8  ;;  %v248_v18 = vld [vmem:[%s1645_s17 + $0x48] sm:$0xff]  ;;  %v274_v20 = vpack.c.bf16 %v246_v16, %v245_v15  ;;  %v249_v22 = vld [vmem:[%s1645_s17 + $0x50] sm:$0xff]  ;;  %v250_v23 = vld [vmem:[%s1645_s17 + $0x58] sm:$0xff]  ;;  %s1453_s7 = scalar_lea.vmem %s1776_s23, 2048  ;;  %p1460_p0 = scmp.lt.s32.totalorder %s1776_s23, %s1458_s9 }
  0x1c   : > { %1382 = vmatprep.subr.bf16.mxu1 %v1447_v4  ;;  %1301 = vmatmul.mubr.msk.bf16.vlgmr.msra.gmra.mxu0 %vm295_vm1, %v272_v12  ;;  %v275_v21 = vpack.c.bf16 %v248_v18, %v247_v17  ;;  %v251_v24 = vld [vmem:[%s1645_s17 + $0x60] sm:$0xff]  ;;  %v252_v25 = vld [vmem:[%s1645_s17 + $0x68] sm:$0xff]  ;;  %v276_v26 = vpack.c.bf16 %v250_v23, %v249_v22  ;;  %v253_v28 = vld [vmem:[%s1645_s17 + $0x70] sm:$0xff]  ;;  %p1454_p11 = scmp.ne.s32.totalorder %s1776_s23, %s1453_s7  ;;  %p1461_p1 = scmp.lt.s32.totalorder %s1459_s10, %s1453_s7 }
  0x1d   : > { %1304 = vmatprep.mubr.msk.bf16.mxu0 %vm295_vm1, %v273_v13  ;;  %1333 = vmatpush3.bf16.msra.mxu0 %v1445_v1  ;;  %v277_v27 = vpack.c.bf16 %v252_v25, %v251_v24  ;;  %v254_v29 = vld [vmem:[%s1645_s17 + $0x78] sm:$0xff]  ;;  %v255_v30 = vld [vmem:[%s1645_s17 + $0x80] sm:$0xff]  ;;  %v256_v31 = vld [vmem:[%s1645_s17 + $0x88] sm:$0xff] }
  0x1e   : > { %1334 = vmatprep.subr.bf16.mxu0 %v1446_v3  ;;  %v278_v32 = vpack.c.bf16 %v254_v29, %v253_v28  ;;  %v279_v33 = vpack.c.bf16 %v256_v31, %v255_v30  ;;  %v257_v34 = vld [vmem:[%s1645_s17 + $0x90] sm:$0xff]  ;;  %v258_v35 = vld [vmem:[%s1645_s17 + $0x98] sm:$0xff]  ;;  %v259_v36 = vld [vmem:[%s1645_s17 + $0xa0] sm:$0xff]  ;;  %p1455_p12 = pnand %p1454_p11, %p1619_p5  ;;  %p1462_p2 = por %p1461_p1, %p1460_p0 }
  0x1f   : > { %1390 = vmatpush3.bf16.msra.mxu1 %v1447_v4  ;;  %v260_v37 = vld [vmem:[%s1645_s17 + $0xa8] sm:$0xff]  ;;  %v280_v38 = vpack.c.bf16 %v258_v35, %v257_v34  ;;  %v261_v40 = vld [vmem:[%s1645_s17 + $0xb0] sm:$0xff]  ;;  %v262_v41 = vld [vmem:[%s1645_s17 + $0xb8] sm:$0xff] }
  0x20   : > { %1383 = vmatprep.subr.bf16.mxu1 %v1448_v14  ;;  %v281_v39 = vpack.c.bf16 %v260_v37, %v259_v36  ;;  %v263_v42 = vld [vmem:[%s1645_s17 + $0xc0] sm:$0xff]  ;;  %v264_v43 = vld [vmem:[%s1645_s17 + $0xc8] sm:$0xff]  ;;  %v282_v44 = vpack.c.bf16 %v262_v41, %v261_v40  ;;  %v265_v46 = vld [vmem:[%s1645_s17 + $0xd0] sm:$0xff]  ;;  %p1456_p13 = pneg %p1455_p12 }
  0x21   : > { %1335 = vmatpush3.bf16.msra.mxu0 %v1446_v3  ;;  %v283_v45 = vpack.c.bf16 %v264_v43, %v263_v42  ;;  %v266_v47 = vld [vmem:[%s1645_s17 + $0xd8] sm:$0xff]  ;;  %v267_v48 = vld [vmem:[%s1645_s17 + $0xe0] sm:$0xff]  ;;  %v268_v49 = vld [vmem:[%s1645_s17 + $0xe8] sm:$0xff] }
  0x22   : > { %1336 = vmatprep.subr.bf16.mxu0 %v1447_v4  ;;  %v284_v50 = vpack.c.bf16 %v266_v47, %v265_v46  ;;  %v285_v51 = vpack.c.bf16 %v268_v49, %v267_v48  ;;  %v269_v52 = vld [vmem:[%s1645_s17 + $0xf0] sm:$0xff]  ;;  %v270_v53 = vld [vmem:[%s1645_s17 + $0xf8] sm:$0xff]  ;;  %v1716_v59 = vld [vmem:[%s1888_s3] ss:$0 sm:$0xff]  ;;  %s1160_s17 = sshll.u32 %s1602_s22, 11  ;;  %p1463_p3 = pnand %p1462_p2, %p1456_p13 }
  0x23   : > { %1391 = vmatpush3.bf16.msra.mxu1 %v1448_v14  ;;  %v286_v54 = vpack.c.bf16 %v270_v53, %v269_v52  ;;  %s1774_s30 = scalar_lea.hbm %s1889_s4, %s1160_s17 }
  0x24   : > { %1384 = vmatprep.subr.bf16.mxu1 %v1449_v19  ;;  %1305 = vmatmul.mubr.msk.bf16.gmra.mxu0 %vm295_vm1, %v274_v20 }
  0x25   : > { %1308 = vmatprep.mubr.msk.bf16.mxu0 %vm295_vm1, %v275_v21  ;;  %1337 = vmatpush3.bf16.msra.mxu0 %v1447_v4 }
  0x26   : > { %1338 = vmatprep.subr.bf16.mxu0 %v1448_v14 }
  0x27   : > { %1392 = vmatpush3.bf16.msra.mxu1 %v1449_v19 }
  0x28   : > { %1385 = vmatprep.subr.bf16.mxu1 %v1450_v55 }
  0x29   : > { %1339 = vmatpush3.bf16.msra.mxu0 %v1448_v14 }
  0x2a   : > { %1340 = vmatprep.subr.bf16.mxu0 %v1449_v19 }
  0x2b   : > { %1393 = vmatpush3.bf16.msra.mxu1 %v1450_v55 }
  0x2c   : > { %1309 = vmatmul.mubr.msk.bf16.gmra.mxu0 %vm295_vm1, %v276_v26  ;;  %1386 = vmatprep.subr.bf16.mxu1 %v1451_v56 }
  0x2d   : > { %1312 = vmatprep.mubr.msk.bf16.mxu0 %vm295_vm1, %v277_v27  ;;  %1341 = vmatpush3.bf16.msra.mxu0 %v1449_v19 }
  0x2e   : > { %1342 = vmatprep.subr.bf16.mxu0 %v1450_v55 }
  0x2f   : > { %1394 = vmatpush3.bf16.msra.mxu1 %v1451_v56 }
  0x30   : > { %1387 = vmatprep.subr.bf16.mxu1 %v1452_v57 }
  0x31   : > { %1343 = vmatpush3.bf16.msra.mxu0 %v1450_v55 }
  0x32   : > { %1344 = vmatprep.subr.bf16.mxu0 %v1451_v56 }
  0x33   : > { %1395 = vmatpush3.bf16.msra.mxu1 %v1452_v57 }
  0x34   : > { %1313 = vmatmul.mubr.msk.bf16.gmra.mxu0 %vm295_vm1, %v278_v32 }
  0x35   : > { %1316 = vmatprep.mubr.msk.bf16.mxu0 %vm295_vm1, %v279_v33  ;;  %1345 = vmatpush3.bf16.msra.mxu0 %v1451_v56 }
  0x36   : > { %1346 = vmatprep.subr.bf16.mxu0 %v1452_v57 }
  0x39   : > { %1347 = vmatpush3.bf16.msra.mxu0 %v1452_v57 }
  0x3c   : > { %1317 = vmatmul.mubr.msk.bf16.gmra.mxu0 %vm295_vm1, %v280_v38 }
  0x3d   : > { %1320 = vmatprep.mubr.msk.bf16.mxu0 %vm295_vm1, %v281_v39 }
  0x44   : > { %1321 = vmatmul.mubr.msk.bf16.gmra.mxu0 %vm295_vm1, %v282_v44 }
  0x45   : > { %1324 = vmatprep.mubr.msk.bf16.mxu0 %vm295_vm1, %v283_v45 }
  0x4c   : > { %1325 = vmatmul.mubr.msk.bf16.gmra.mxu0 %vm295_vm1, %v284_v50 }
  0x4d   : > { %1328 = vmatprep.mubr.msk.bf16.mxu0 %vm295_vm1, %v285_v51 }
  0x54   : > { %1329 = vmatmul.mubr.msk.bf16.gmra.mxu0 %vm295_vm1, %v286_v54 }
  0xdc   : > { %v1302_v58 = vpop.f32.mrf.mxu0 }
  0xdd   : > { %v391_v62 = vadd.f32 %v1302_v58, %v1716_v59 }
  0xde   : > { %v382_v60 = vpop.f32.mrf.mxu0 }
  0xdf   : > { %v383_v1 = vadd.f32 %v1716_v59, %v382_v60 }
  0xe0   : > { %v1303_v61 = vpop.f32.mrf.mxu0 }
  0xe1   : > { %v394_v63 = vadd.f32 %v1303_v61, %v1716_v59 }
  0xe2   : > { %v385_v0 = vpop.f32.mrf.mxu0 }
  0xe3   : > { %v510_v2 = vpack.c.bf16 %v394_v63, %v391_v62  ;;  %v386_v3 = vadd.f32 %v1716_v59, %v385_v0 }
  0xe4   : > { %v1306_v4 = vpop.f32.mrf.mxu0 }
  0xe5   : > { %1242 = vst [vmem:[%s1723_s16 + $0x8] sm:$0xff] %v510_v2   ;;  %v509_v5 = vpack.c.bf16 %v386_v3, %v383_v1  ;;  %v407_v8 = vadd.f32 %v1306_v4, %v1716_v59 }
  0xe6   : > { %v398_v6 = vpop.f32.mrf.mxu0 }
  0xe7   : > { %1166 = vst [vmem:[%s1723_s16] sm:$0xff] %v509_v5   ;;  %1348 = vmatprep.mubr.bf16.mxu0 %v509_v5  ;;  %v399_v11 = vadd.f32 %v1716_v59, %v398_v6 }
  0xe8   : > { %v1307_v7 = vpop.f32.mrf.mxu0  ;;  %1349 = vmatmul.mubr.bf16.vlgmr.msra.gmra.mxu0 %v510_v2 }
  0xe9   : > { %v410_v9 = vadd.f32 %v1307_v7, %v1716_v59 }
  0xea   : > { %v401_v10 = vpop.f32.mrf.mxu0 }
  0xeb   : > { %v512_v12 = vpack.c.bf16 %v410_v9, %v407_v8  ;;  %v402_v13 = vadd.f32 %v1716_v59, %v401_v10 }
  0xec   : > { %v1310_v14 = vpop.f32.mrf.mxu0 }
  0xed   : > { %1244 = vst [vmem:[%s1723_s16 + $0x18] sm:$0xff] %v512_v12   ;;  %v511_v15 = vpack.c.bf16 %v402_v13, %v399_v11  ;;  %v423_v18 = vadd.f32 %v1310_v14, %v1716_v59 }
  0xee   : > { %v414_v16 = vpop.f32.mrf.mxu0 }
  0xef   : > { %1352 = vmatprep.mubr.bf16.mxu1 %v511_v15  ;;  %1243 = vst [vmem:[%s1723_s16 + $0x10] sm:$0xff] %v511_v15   ;;  %v415_v21 = vadd.f32 %v1716_v59, %v414_v16 }
  0xf0   : > { %v1311_v17 = vpop.f32.mrf.mxu0  ;;  %1353 = vmatmul.mubr.bf16.vlgmr.msra.gmra.mxu1 %v512_v12 }
  0xf1   : > { %v426_v19 = vadd.f32 %v1311_v17, %v1716_v59 }
  0xf2   : > { %v417_v20 = vpop.f32.mrf.mxu0 }
  0xf3   : > { %v514_v22 = vpack.c.bf16 %v426_v19, %v423_v18  ;;  %v418_v23 = vadd.f32 %v1716_v59, %v417_v20 }
  0xf4   : > { %v1314_v24 = vpop.f32.mrf.mxu0 }
  0xf5   : > { %1246 = vst [vmem:[%s1723_s16 + $0x28] sm:$0xff] %v514_v22   ;;  %v513_v25 = vpack.c.bf16 %v418_v23, %v415_v21  ;;  %v439_v28 = vadd.f32 %v1314_v24, %v1716_v59 }
  0xf6   : > { %v430_v26 = vpop.f32.mrf.mxu0 }
  0xf7   : > { %1245 = vst [vmem:[%s1723_s16 + $0x20] sm:$0xff] %v513_v25   ;;  %1356 = vmatprep.mubr.bf16.mxu1 %v513_v25  ;;  %v431_v31 = vadd.f32 %v1716_v59, %v430_v26 }
  0xf8   : > { %v1315_v27 = vpop.f32.mrf.mxu0  ;;  %1357 = vmatmul.mubr.bf16.gmra.mxu1 %v514_v22 }
  0xf9   : > { %v442_v29 = vadd.f32 %v1315_v27, %v1716_v59 }
  0xfa   : > { %v433_v30 = vpop.f32.mrf.mxu0 }
  0xfb   : > { %v516_v32 = vpack.c.bf16 %v442_v29, %v439_v28  ;;  %v434_v33 = vadd.f32 %v1716_v59, %v433_v30 }
  0xfc   : > { %v1318_v34 = vpop.f32.mrf.mxu0 }
  0xfd   : > { %1248 = vst [vmem:[%s1723_s16 + $0x38] sm:$0xff] %v516_v32   ;;  %v515_v35 = vpack.c.bf16 %v434_v33, %v431_v31  ;;  %v455_v38 = vadd.f32 %v1318_v34, %v1716_v59 }
  0xfe   : > { %v446_v36 = vpop.f32.mrf.mxu0 }
  0xff   : > { %1247 = vst [vmem:[%s1723_s16 + $0x30] sm:$0xff] %v515_v35   ;;  %1360 = vmatprep.mubr.bf16.mxu1 %v515_v35  ;;  %v447_v41 = vadd.f32 %v1716_v59, %v446_v36 }
 0x100   : > { %v1319_v37 = vpop.f32.mrf.mxu0  ;;  %1361 = vmatmul.mubr.bf16.gmra.mxu1 %v516_v32 }
 0x101   : > { %v458_v39 = vadd.f32 %v1319_v37, %v1716_v59 }
 0x102   : > { %v449_v40 = vpop.f32.mrf.mxu0 }
 0x103   : > { %v518_v42 = vpack.c.bf16 %v458_v39, %v455_v38  ;;  %v450_v43 = vadd.f32 %v1716_v59, %v449_v40 }
 0x104   : > { %v1322_v44 = vpop.f32.mrf.mxu0 }
 0x105   : > { %1250 = vst [vmem:[%s1723_s16 + $0x48] sm:$0xff] %v518_v42   ;;  %v517_v45 = vpack.c.bf16 %v450_v43, %v447_v41  ;;  %v471_v48 = vadd.f32 %v1322_v44, %v1716_v59 }
 0x106   : > { %v462_v46 = vpop.f32.mrf.mxu0 }
 0x107   : > { %1249 = vst [vmem:[%s1723_s16 + $0x40] sm:$0xff] %v517_v45   ;;  %1364 = vmatprep.mubr.bf16.mxu1 %v517_v45  ;;  %v463_v51 = vadd.f32 %v1716_v59, %v462_v46 }
 0x108   : > { %v1323_v47 = vpop.f32.mrf.mxu0  ;;  %1365 = vmatmul.mubr.bf16.gmra.mxu1 %v518_v42 }
 0x109   : > { %v474_v49 = vadd.f32 %v1323_v47, %v1716_v59 }
 0x10a   : > { %v465_v50 = vpop.f32.mrf.mxu0 }
 0x10b   : > { %v520_v52 = vpack.c.bf16 %v474_v49, %v471_v48  ;;  %v466_v53 = vadd.f32 %v1716_v59, %v465_v50 }
 0x10c   : > { %v1326_v54 = vpop.f32.mrf.mxu0 }
 0x10d   : > { %1252 = vst [vmem:[%s1723_s16 + $0x58] sm:$0xff] %v520_v52   ;;  %v519_v55 = vpack.c.bf16 %v466_v53, %v463_v51  ;;  %v487_v58 = vadd.f32 %v1326_v54, %v1716_v59 }
 0x10e   : > { %v478_v56 = vpop.f32.mrf.mxu0 }
 0x10f   : > { %1251 = vst [vmem:[%s1723_s16 + $0x50] sm:$0xff] %v519_v55   ;;  %1368 = vmatprep.mubr.bf16.mxu1 %v519_v55  ;;  %v479_v62 = vadd.f32 %v1716_v59, %v478_v56 }
 0x110   : > { %v1327_v57 = vpop.f32.mrf.mxu0  ;;  %1369 = vmatmul.mubr.bf16.gmra.mxu1 %v520_v52 }
 0x111   : > { %v490_v60 = vadd.f32 %v1327_v57, %v1716_v59 }
 0x112   : > { %v481_v61 = vpop.f32.mrf.mxu0 }
 0x113   : > { %v522_v63 = vpack.c.bf16 %v490_v60, %v487_v58  ;;  %v482_v0 = vadd.f32 %v1716_v59, %v481_v61 }
 0x114   : > { %v1330_v1 = vpop.f32.mrf.mxu0 }
 0x115   : > { %1254 = vst [vmem:[%s1723_s16 + $0x68] sm:$0xff] %v522_v63   ;;  %v521_v2 = vpack.c.bf16 %v482_v0, %v479_v62  ;;  %v503_v5 = vadd.f32 %v1330_v1, %v1716_v59 }
 0x116   : > { %v494_v3 = vpop.f32.mrf.mxu0 }
 0x117   : > { %1253 = vst [vmem:[%s1723_s16 + $0x60] sm:$0xff] %v521_v2   ;;  %1372 = vmatprep.mubr.bf16.mxu1 %v521_v2  ;;  %v495_v8 = vadd.f32 %v1716_v59, %v494_v3 }
 0x118   : > { %v1331_v4 = vpop.f32.mrf.mxu0  ;;  %1373 = vmatmul.mubr.bf16.gmra.mxu1 %v522_v63 }
 0x119   : > { %v506_v6 = vadd.f32 %v1331_v4, %v1716_v59 }
 0x11a   : > { %v497_v7 = vpop.f32.mrf.mxu0 }
 0x11b   : > { %v524_v9 = vpack.c.bf16 %v506_v6, %v503_v5  ;;  %v498_v10 = vadd.f32 %v1716_v59, %v497_v7 }
 0x11d   : > { %1256 = vst [vmem:[%s1723_s16 + $0x78] sm:$0xff] %v524_v9   ;;  %v523_v11 = vpack.c.bf16 %v498_v10, %v495_v8 }
 0x11f   : > { %1255 = vst [vmem:[%s1723_s16 + $0x70] sm:$0xff] %v523_v11   ;;  %1376 = vmatprep.mubr.bf16.mxu1 %v523_v11 }
 0x120   : > { %1377 = vmatmul.mubr.bf16.gmra.mxu1 %v524_v9 }
 0x121   : > { %1466 = shalt.err (!%p1463_p3)
}
 0x122   : > { %s1467_s11 = scalar_lea.hbm %s1774_s30, 2048  ;;  %s1471_s15 = scalar_lea.hbm %s1889_s4, 4096 }
 0x123   : > { %p1468_p4 = scmp.ne.s32.totalorder %s1774_s30, %s1467_s11  ;;  %p1472_p9 = scmp.lt.s32.totalorder %s1774_s30, %s1889_s4 }
 0x124   : > { %p1473_p10 = scmp.lt.s32.totalorder %s1471_s15, %s1467_s11 }
 0x125   : > { %p1469_p7 = pnand %p1468_p4, %p1619_p5 }
 0x126   : > { %p1474_p11 = por %p1473_p10, %p1472_p9 }
 0x127   : > { %p1470_p8 = pneg %p1469_p7 }
 0x129   : > { %p1475_p12 = pnand %p1474_p11, %p1470_p8 }
 0x12b   : > { %1478 = shalt.err (!%p1475_p12)
}
 0x12c   : > { %s1546_s25 = smov 64   ;;  %s1547_s26 = smov 4  }
 0x12d   : > { %1397 = dma.vmem_to_hbm [thread:$0]  (%p1619_p5), %s1776_s23, 2048, %s1774_s30, %s927_s6, %s1546_s25, %s1546_s25, %s1547_s26  }
 0x12e   : > { %s1060_s7 = sshll.u32 %s1711_s12, 8  ;;  %s1161_s23 = sshll.u32 %s1602_s22, 12 }
 0x12f   : > { %s1802_s8 = scalar_lea.vmem [#allocation4], %s1060_s7  ;;  %s1839_s10 = scalar_lea.hbm %s1890_s5, %s1161_s23 }
 0x130   : > { %s961_s30 = sshll.u32 %s1802_s8, 4  ;;  %s932_s11 = scalar_lea.sflag [#allocation5], %s1711_s12  ;;  %s1841_s30 = int_to_ptr.vmem [resolvable:$true] %s961_s30 }
 0x131   : > { %s1479_s13 = scalar_lea.vmem %s1841_s30, 4096  ;;  %s1548_s22 = smov [#allocation4]  }
 0x132   : > { %p1480_p13 = scmp.ne.s32.totalorder %s1841_s30, %s1479_s13  ;;  %s1483_s14 = sshll.u32 %s1548_s22, 4  ;;  %s1484_s14 = int_to_ptr.vmem [resolvable:$false] %s1483_s14 }
 0x133   : > { %s1485_s15 = scalar_lea.vmem %s1484_s14, 8192  ;;  %p1486_p2 = scmp.lt.s32.totalorder %s1841_s30, %s1484_s14 }
 0x134   : > { %p1481_p0 = pnand %p1480_p13, %p1619_p5  ;;  %p1487_p3 = scmp.lt.s32.totalorder %s1485_s15, %s1479_s13 }
 0x136   : > { %p1482_p1 = pneg %p1481_p0  ;;  %p1488_p4 = por %p1487_p3, %p1486_p2 }
 0x138   : > { %p1489_p7 = pnand %p1488_p4, %p1482_p1 }
 0x1a8   : > { %v1350_v59 = vpop.f32.mrf.mxu0 }
 0x1a9   : > { %752 = vst [vmem:[%s1802_s8 + $0x10] sm:$0xff] %v1350_v59 }
 0x1aa   : > { %v623_v12 = vpop.f32.mrf.mxu0 }
 0x1ab   : > { %750 = vst [vmem:[%s1802_s8] sm:$0xff] %v623_v12 }
 0x1ac   : > { %v1351_v13 = vpop.f32.mrf.mxu0 }
 0x1ad   : > { %753 = vst [vmem:[%s1802_s8 + $0x18] sm:$0xff] %v1351_v13 }
 0x1ae   : > { %v626_v14 = vpop.f32.mrf.mxu0 }
 0x1af   : > { %751 = vst [vmem:[%s1802_s8 + $0x8] sm:$0xff] %v626_v14 }
 0x1b0   : > { %v1354_v15 = vpop.f32.mrf.mxu1 }
 0x1b1   : > { %756 = vst [vmem:[%s1802_s8 + $0x30] sm:$0xff] %v1354_v15 }
 0x1b2   : > { %v639_v16 = vpop.f32.mrf.mxu1 }
 0x1b3   : > { %754 = vst [vmem:[%s1802_s8 + $0x20] sm:$0xff] %v639_v16 }
 0x1b4   : > { %v1355_v17 = vpop.f32.mrf.mxu1 }
 0x1b5   : > { %757 = vst [vmem:[%s1802_s8 + $0x38] sm:$0xff] %v1355_v17 }
 0x1b6   : > { %v642_v18 = vpop.f32.mrf.mxu1 }
 0x1b7   : > { %755 = vst [vmem:[%s1802_s8 + $0x28] sm:$0xff] %v642_v18 }
 0x1b8   : > { %v1358_v19 = vpop.f32.mrf.mxu1 }
 0x1b9   : > { %760 = vst [vmem:[%s1802_s8 + $0x50] sm:$0xff] %v1358_v19 }
 0x1ba   : > { %v655_v20 = vpop.f32.mrf.mxu1 }
 0x1bb   : > { %758 = vst [vmem:[%s1802_s8 + $0x40] sm:$0xff] %v655_v20 }
 0x1bc   : > { %v1359_v21 = vpop.f32.mrf.mxu1 }
 0x1bd   : > { %761 = vst [vmem:[%s1802_s8 + $0x58] sm:$0xff] %v1359_v21 }
 0x1be   : > { %v658_v22 = vpop.f32.mrf.mxu1 }
 0x1bf   : > { %759 = vst [vmem:[%s1802_s8 + $0x48] sm:$0xff] %v658_v22 }
 0x1c0   : > { %v1362_v23 = vpop.f32.mrf.mxu1 }
 0x1c1   : > { %764 = vst [vmem:[%s1802_s8 + $0x70] sm:$0xff] %v1362_v23 }
 0x1c2   : > { %v671_v24 = vpop.f32.mrf.mxu1 }
 0x1c3   : > { %762 = vst [vmem:[%s1802_s8 + $0x60] sm:$0xff] %v671_v24 }
 0x1c4   : > { %v1363_v25 = vpop.f32.mrf.mxu1 }
 0x1c5   : > { %765 = vst [vmem:[%s1802_s8 + $0x78] sm:$0xff] %v1363_v25 }
 0x1c6   : > { %v674_v26 = vpop.f32.mrf.mxu1 }
 0x1c7   : > { %763 = vst [vmem:[%s1802_s8 + $0x68] sm:$0xff] %v674_v26 }
 0x1c8   : > { %v1366_v27 = vpop.f32.mrf.mxu1 }
 0x1c9   : > { %768 = vst [vmem:[%s1802_s8 + $0x90] sm:$0xff] %v1366_v27 }
 0x1ca   : > { %v687_v28 = vpop.f32.mrf.mxu1 }
 0x1cb   : > { %766 = vst [vmem:[%s1802_s8 + $0x80] sm:$0xff] %v687_v28 }
 0x1cc   : > { %v1367_v29 = vpop.f32.mrf.mxu1 }
 0x1cd   : > { %769 = vst [vmem:[%s1802_s8 + $0x98] sm:$0xff] %v1367_v29 }
 0x1ce   : > { %v690_v30 = vpop.f32.mrf.mxu1 }
 0x1cf   : > { %767 = vst [vmem:[%s1802_s8 + $0x88] sm:$0xff] %v690_v30 }
 0x1d0   : > { %v1370_v31 = vpop.f32.mrf.mxu1 }
 0x1d1   : > { %772 = vst [vmem:[%s1802_s8 + $0xb0] sm:$0xff] %v1370_v31 }
 0x1d2   : > { %v703_v32 = vpop.f32.mrf.mxu1 }
 0x1d3   : > { %770 = vst [vmem:[%s1802_s8 + $0xa0] sm:$0xff] %v703_v32 }
 0x1d4   : > { %v1371_v33 = vpop.f32.mrf.mxu1 }
 0x1d5   : > { %773 = vst [vmem:[%s1802_s8 + $0xb8] sm:$0xff] %v1371_v33 }
 0x1d6   : > { %v706_v34 = vpop.f32.mrf.mxu1 }
 0x1d7   : > { %771 = vst [vmem:[%s1802_s8 + $0xa8] sm:$0xff] %v706_v34 }
 0x1d8   : > { %v1374_v35 = vpop.f32.mrf.mxu1 }
 0x1d9   : > { %776 = vst [vmem:[%s1802_s8 + $0xd0] sm:$0xff] %v1374_v35 }
 0x1da   : > { %v719_v36 = vpop.f32.mrf.mxu1 }
 0x1db   : > { %774 = vst [vmem:[%s1802_s8 + $0xc0] sm:$0xff] %v719_v36 }
 0x1dc   : > { %v1375_v37 = vpop.f32.mrf.mxu1 }
 0x1dd   : > { %777 = vst [vmem:[%s1802_s8 + $0xd8] sm:$0xff] %v1375_v37 }
 0x1de   : > { %v722_v38 = vpop.f32.mrf.mxu1 }
 0x1df   : > { %775 = vst [vmem:[%s1802_s8 + $0xc8] sm:$0xff] %v722_v38 }
 0x1e0   : > { %v1378_v39 = vpop.f32.mrf.mxu1 }
 0x1e1   : > { %780 = vst [vmem:[%s1802_s8 + $0xf0] sm:$0xff] %v1378_v39 }
 0x1e2   : > { %v735_v40 = vpop.f32.mrf.mxu1 }
 0x1e3   : > { %778 = vst [vmem:[%s1802_s8 + $0xe0] sm:$0xff] %v735_v40 }
 0x1e4   : > { %v1379_v41 = vpop.f32.mrf.mxu1 }
 0x1e5   : > { %781 = vst [vmem:[%s1802_s8 + $0xf8] sm:$0xff] %v1379_v41 }
 0x1e6   : > { %v738_v42 = vpop.f32.mrf.mxu1 }
 0x1e7   : > { %779 = vst [vmem:[%s1802_s8 + $0xe8] sm:$0xff] %v738_v42 }
 0x1e8   : > { %1492 = shalt.err (!%p1489_p7)
}
 0x1e9   : > { %s1493_s16 = scalar_lea.hbm %s1839_s10, 4096  ;;  %s1497_s26 = scalar_lea.hbm %s1890_s5, 8192 }
 0x1ea   : > { %p1494_p8 = scmp.ne.s32.totalorder %s1839_s10, %s1493_s16  ;;  %p1498_p11 = scmp.lt.s32.totalorder %s1839_s10, %s1890_s5 }
 0x1eb   : > { %p1499_p12 = scmp.lt.s32.totalorder %s1497_s26, %s1493_s16 }
 0x1ec   : > { %p1495_p9 = pnand %p1494_p8, %p1619_p5 }
 0x1ed   : > { %p1500_p13 = por %p1499_p12, %p1498_p11 }
 0x1ee   : > { %p1496_p10 = pneg %p1495_p9 }
 0x1f0   : > { %p1501_p0 = pnand %p1500_p13, %p1496_p10 }
 0x1f2   : > { %1504 = shalt.err (!%p1501_p0)
}
 0x1f3   : > { %s1549_s23 = smov 128   ;;  %s1550_s6 = smov 8  }
 0x1f4   : > { %1398 = dma.vmem_to_hbm [thread:$0]  (%p1619_p5), %s1841_s30, 4096, %s1839_s10, %s932_s11, %s1549_s23, %s1549_s23, %s1550_s6  }
 0x1f5 PF: > { %p1408_p1 = scmp.ge.s32.totalorder %s1543_s21, 2  ;;  %s976_s9 = sand.u32 1, %s1531_s18  }
 0x1f6   : > { %s977_s13 = scalar_lea.sflag [#allocation3], %s976_s9 }
 0x1f7   : > { %p1402_p2 = pnand %p1408_p1, %p1623_p6 }
 0x1f9   : > { %p1403_p3 = pneg %p1402_p2 }
 0x1fb   : > { %1522 = dma.done.wait (%p1403_p3), %s977_s13, 2048  }
 0x1fc   : > { %1524 = vsyncadd (%p1403_p3), %s977_s13, 4294965248  ;;  %s986_s22 = scalar_lea.sflag [#allocation5], %s976_s9 }
 0x1fd   : > { %1526 = dma.done.wait (%p1403_p3), %s986_s22, 4096  }
 0x1fe   : > { %1528 = vsyncadd (%p1403_p3), %s986_s22, 4294963200  ;;  %p19_p5 = scmp.ge.s32.totalorder %s1606_s24, 4   ;;  %s1893_s18 = smov %s1535_s19 }
 0x1ff   : > { %s1894_s19 = smov %s1539_s20  ;;  %s1895_s20 = smov %s1617_s27 }
 0x200   : > { %s1896_s21 = smov %s1606_s24  ;;  %21 = sbr.rel (!%p19_p5) target bundleno = 5 (0x5), region = 88 }
 0x205   :  { %991 = vsyncpa [#allocation3], 1 }
 0x206   :  { %993 = vsyncpa [#allocation3 + $0x1], 1 }
 0x207   :  { %994 = vsyncpa [#allocation5], 1 }
 0x208   :  { %996 = vsyncpa [#allocation5 + $0x1], 1 }

</bundles_post_ra>
